<compile_context>
chip_gen: v6e
topology: v6e:2x2x1
jax: 0.10.0
libtpu: 0.0.40
codegen_flags: <defaults>
</compile_context>

<pallas_src>
import functools

import jax
import jax.numpy as jnp
from jax import lax
from jax.experimental import pallas as pl
from jax.experimental.pallas import tpu as pltpu


def _round_up(x, m):
    return ((x + m - 1) // m) * m


# ---------------------------------------------------------------------------
# Fused per-frame Pallas kernel
# ---------------------------------------------------------------------------

def _fused_forward_kernel(*refs, n_layers, b_real, inv_count, eps):
    """One grid step == one frame t (all batch rows of that frame).

    refs = (x, W_layer_0..n-1, W_head, W_cls, bias, gamma, beta, sel, selT, out)
      x          : (Bp, D0p)  f32  flattened frame (padded batch rows are 0)
      W_*        : bf16 unrolled linear maps (pool/conv/convT folded at init)
      bias       : (1, DLp)   f32  ConvTranspose2d bias broadcast over space
      gamma/beta : (1, DLp)   f32  BN affine params in channel space (cols < C)
      sel        : (DLp, DLp) f32  output-column -> channel summing selector
      selT       : (DLp, DLp) f32  channel -> output-column broadcast selector
      out        : (Bp, DLp)  f32
    """
    x_ref = refs[0]
    layer_refs = refs[1:1 + n_layers]
    (head_ref, cls_ref, bias_ref, gamma_ref, beta_ref,
     sel_ref, selt_ref, o_ref) = refs[1 + n_layers:]

    # SpatioTemporalRF stack: (pool ∘ conv) as one matmul per layer, then ReLU.
    h = x_ref[...].astype(jnp.bfloat16)
    for w_ref in layer_refs:
        h = jnp.dot(h, w_ref[...], preferred_element_type=jnp.float32)
        h = jnp.maximum(h, 0.0).astype(jnp.bfloat16)

    # pool + head Conv2d(.., n_classes, 3) + mean over channel paths (fused).
    h = jnp.dot(h, head_ref[...], preferred_element_type=jnp.float32)

    # classifier ConvTranspose2d(n_classes, n_classes, 5) + bias.
    y = jnp.dot(h.astype(jnp.bfloat16), cls_ref[...],
                preferred_element_type=jnp.float32)
    y = y + bias_ref[...]

    # Zero padded batch rows so they do not pollute the BN statistics.
    row_ids = lax.broadcasted_iota(jnp.int32, y.shape, 0)
    y = jnp.where(row_ids < b_real, y, 0.0)

    # BatchNorm2d (training-mode per-frame stats over B*H*W) + ReLU epilogue.
    # Output columns are channel-major, so per-channel sums are a matmul with
    # a 0/1 selector; biased variance matches torch's training-mode norm.
    sel = sel_ref[...]
    rows_sum = jnp.dot(y, sel, preferred_element_type=jnp.float32)
    rows_sq = jnp.dot(y * y, sel, preferred_element_type=jnp.float32)
    mean_c = jnp.sum(rows_sum, axis=0, keepdims=True) * inv_count      # (1, DLp)
    ex2_c = jnp.sum(rows_sq, axis=0, keepdims=True) * inv_count
    var_c = ex2_c - mean_c * mean_c
    scale_c = gamma_ref[...] * lax.rsqrt(var_c + eps)
    shift_c = beta_ref[...] - mean_c * scale_c
    # Broadcast channel-space scale/shift back to the output columns.
    scale_b = jnp.broadcast_to(scale_c, y.shape)
    shift_b = jnp.broadcast_to(shift_c, y.shape)
    scale = jnp.dot(scale_b, selt_ref[...], preferred_element_type=jnp.float32)
    shift = jnp.dot(shift_b, selt_ref[...], preferred_element_type=jnp.float32)
    o_ref[...] = jnp.maximum(y * scale + shift, 0.0)


# ---------------------------------------------------------------------------
# Init-time helpers: build unrolled linear maps for pool/conv/convT blocks
# ---------------------------------------------------------------------------

def _pool2_nchw(x):
    n, c, h, w = x.shape
    return x.reshape(n, c, h // 2, 2, w // 2, 2).mean(axis=(3, 5))


def _conv_same_nchw(x, w):
    p = w.shape[-1] // 2
    return lax.conv_general_dilated(
        x, w, window_strides=(1, 1), padding=[(p, p), (p, p)],
        dimension_numbers=('NCHW', 'OIHW', 'NCHW'),
        precision=lax.Precision.HIGHEST)


def _conv_transpose_nchw(x, w_ct):
    # ConvTranspose2d(stride=1, padding=0) == 'full' conv with the spatially
    # flipped kernel and swapped in/out channel axes.
    k = w_ct.shape[-1]
    w_eq = jnp.transpose(jnp.flip(w_ct, axis=(2, 3)), (1, 0, 2, 3))
    return lax.conv_general_dilated(
        x, w_eq, window_strides=(1, 1), padding=[(k - 1, k - 1)] * 2,
        dimension_numbers=('NCHW', 'OIHW', 'NCHW'),
        precision=lax.Precision.HIGHEST)


def _linear_map_matrix(fn, in_shape):
    """(D_in, D_out) matrix of the linear map `fn` on NCHW-flattened inputs."""
    d_in = 1
    for s in in_shape:
        d_in *= int(s)
    basis = jnp.eye(d_in, dtype=jnp.float32).reshape((d_in,) + tuple(in_shape))
    return fn(basis).reshape(d_in, -1)


def _pad_mat(m, rows, cols, dtype=jnp.bfloat16):
    r, c = m.shape
    return jnp.zeros((rows, cols), dtype).at[:r, :c].set(m.astype(dtype))


def _pad_row(v, cols, dtype=jnp.float32):
    return jnp.zeros((1, cols), dtype).at[0, :v.shape[0]].set(v.astype(dtype))


# ---------------------------------------------------------------------------
# Model: deterministic synthetic init + jitted forward (one Pallas call)
# ---------------------------------------------------------------------------

def make_spatio_temporal_model(key, *, n_scales=2, n_angles=2, n_ratios=1,
                               n_derivatives=0, channels_in=1, n_classes=3,
                               resolution=(16, 16), channel_layers=2):
    # channels_out of each spatial RF layer == len(rf_parameters).
    # TODO(synk): norse spatial_parameters derivative-combination count assumed 1
    #             for n_derivatives=0 (rf_out = n_angles * n_ratios).
    rf_out = n_angles * n_ratios
    n_groups = n_scales * n_scales                       # channel_taus x scales
    kernel_sizes = list(range(5, 2 * channel_layers + 5, 2))[::-1]   # e.g. [7, 5]
    n_feat = n_groups * rf_out
    H, W = resolution
    eps = 1e-5

    # ---- raw per-path conv weights (what the torch module would hold) ----
    raw_layers = [[] for _ in range(channel_layers)]     # [layer][group]
    head_ws = []
    for _ in range(n_groups):
        cin = channels_in
        for i, k in enumerate(kernel_sizes):
            key, sub = jax.random.split(key)
            w = jax.random.normal(sub, (rf_out, cin, k, k), jnp.float32)
            raw_layers[i].append(w * (1.0 / (cin * k * k) ** 0.5))
            cin = rf_out
        key, sub = jax.random.split(key)
        head_ws.append(jax.random.normal(sub, (n_classes, rf_out, 3, 3),
                                         jnp.float32) * (1.0 / (rf_out * 9) ** 0.5))
    key, sub = jax.random.split(key)
    ct_w = jax.random.normal(sub, (n_classes, n_classes, 5, 5), jnp.float32) * 0.1
    key, sub = jax.random.split(key)
    ct_b = jax.random.normal(sub, (n_classes,), jnp.float32) * 0.1

    # ---- fold every linear block (pool∘conv, pool∘groupconv, pool∘head∘mean,
    #      convT) into a dense unrolled matrix, once, at init time ----
    mats = []
    h_cur, w_cur = H, W
    for i, k in enumerate(kernel_sizes):
        cin_i = channels_in if i == 0 else n_feat
        in_shape = (cin_i, h_cur, w_cur)
        if i == 0:
            # all paths consume the same frame -> stack weights along Cout
            w_stack = jnp.concatenate(raw_layers[0], axis=0)   # (n_feat, Cin, k, k)

            def fn(z, w=w_stack):
                return _conv_same_nchw(_pool2_nchw(z), w)
        else:
            ws = tuple(raw_layers[i])

            def fn(z, ws=ws):
                zp = _pool2_nchw(z)
                outs = [_conv_same_nchw(zp[:, g * rf_out:(g + 1) * rf_out], ws[g])
                        for g in range(n_groups)]
                return jnp.concatenate(outs, axis=1)
        mats.append(_linear_map_matrix(fn, in_shape))
        h_cur //= 2
        w_cur //= 2

    def fn_head(z):
        zp = _pool2_nchw(z)
        outs = [_conv_same_nchw(zp[:, g * rf_out:(g + 1) * rf_out], head_ws[g])
                for g in range(n_groups)]
        return sum(outs) / n_groups

    m_head = _linear_map_matrix(fn_head, (n_feat, h_cur, w_cur))
    h_cur //= 2
    w_cur //= 2                                        # spatial size after head
    h_out, w_out = h_cur + 4, w_cur + 4                # ConvTranspose2d(5, s=1, p=0)
    spatial_out = h_out * w_out

    m_cls = _linear_map_matrix(lambda z: _conv_transpose_nchw(z, ct_w),
                               (n_classes, h_cur, w_cur))

    # ---- pad to lane-friendly shapes; MXU operands cast to bf16 once ----
    widths = [m.shape[1] for m in mats] + [m_head.shape[1], m_cls.shape[1]]
    d0 = channels_in * H * W
    d0p = _round_up(d0, 128)
    widths_p = [_round_up(w_, 128) for w_ in widths]
    kp = [d0p] + widths_p[:-1]

    layer_mats = tuple(_pad_mat(m, kp[i], widths_p[i]) for i, m in enumerate(mats))
    head_mat = _pad_mat(m_head, kp[channel_layers], widths_p[channel_layers])
    cls_mat = _pad_mat(m_cls, kp[channel_layers + 1], widths_p[channel_layers + 1])
    dlp = widths_p[-1]

    bias_full = jnp.repeat(ct_b, spatial_out)          # channel-major layout
    col = jnp.arange(dlp)
    sel = ((col[:, None] // spatial_out == col[None, :])
           & (col[:, None] < n_classes * spatial_out)
           & (col[None, :] < n_classes)).astype(jnp.float32)

    params = {
        'layer_mats': layer_mats,                      # bf16, pool∘conv per layer
        'head_mat': head_mat,                          # bf16, pool∘conv3∘mean
        'cls_mat': cls_mat,                            # bf16, ConvTranspose2d
        'bias': _pad_row(bias_full, dlp),              # f32 (1, DLp)
        'gamma': _pad_row(jnp.ones((n_classes,), jnp.float32), dlp),
        'beta': _pad_row(jnp.zeros((n_classes,), jnp.float32), dlp),
        'sel': sel,                                    # f32 (DLp, DLp)
        'selt': sel.T,                                 # f32 (DLp, DLp)
    }

    @jax.jit
    def _forward_core(x, params):
        T, B = x.shape[0], x.shape[1]
        bp = _round_up(max(B, 8), 8)
        x_flat = x.reshape(T, B, -1).astype(jnp.float32)
        x_pad = jnp.zeros((T, bp, d0p), jnp.float32).at[:, :B, :d0].set(x_flat)

        weight_args = (list(params['layer_mats'])
                       + [params['head_mat'], params['cls_mat'], params['bias'],
                          params['gamma'], params['beta'], params['sel'],
                          params['selt']])

        kernel = functools.partial(
            _fused_forward_kernel, n_layers=channel_layers, b_real=B,
            inv_count=1.0 / (B * spatial_out), eps=eps)

        out_pad = pl.pallas_call(
            kernel,
            out_shape=jax.ShapeDtypeStruct((T, bp, dlp), jnp.float32),
            grid=(T,),
            in_specs=([pl.BlockSpec((None, bp, d0p), lambda t: (t, 0, 0))]
                      + [pl.BlockSpec(a.shape, lambda t: (0, 0))
                         for a in weight_args]),
            out_specs=pl.BlockSpec((None, bp, dlp), lambda t: (t, 0, 0)),
            compiler_params=pltpu.CompilerParams(
                dimension_semantics=("parallel",),      # frames split across TCs
                vmem_limit_bytes=32 * 1024 * 1024),     # safe on v5e/v6e/v7x
        )(x_pad, *weight_args)

        out = out_pad[:, :B, :n_classes * spatial_out]
        return out.reshape(T, B, n_classes, h_out, w_out)

    def forward(x, params):
        """Mirrors torch forward: returns (output, (channel_state,
        classifier_state), activations); activation='relu' => stateless cells."""
        out = _forward_core(x, params)
        channel_state = [None] * n_groups
        classifier_state = None
        activations = []          # ReLU temporal cells carry no membrane state 'v'
        # TODO(synk): torch Dropout(0.1) in train mode is stochastic; identity
        #             (eval behavior) used here.
        return out, (channel_state, classifier_state), activations

    def reference(x, params):
        """Pure-JAX (non-Pallas) mirror of the kernel math, for validation."""
        T, B = x.shape[0], x.shape[1]
        h = x.reshape(T * B, -1).astype(jnp.float32)
        h = jnp.pad(h, ((0, 0), (0, d0p - d0))).astype(jnp.bfloat16)
        for m in params['layer_mats']:
            h = jnp.maximum(jnp.dot(h, m, preferred_element_type=jnp.float32), 0.0)
            h = h.astype(jnp.bfloat16)
        h = jnp.dot(h, params['head_mat'], preferred_element_type=jnp.float32)
        y = jnp.dot(h.astype(jnp.bfloat16), params['cls_mat'],
                    preferred_element_type=jnp.float32) + params['bias']
        y = y[:, :n_classes * spatial_out].reshape(T, B, n_classes, h_out, w_out)
        mean = jnp.mean(y, axis=(1, 3, 4), keepdims=True)
        var = jnp.mean((y - mean) ** 2, axis=(1, 3, 4), keepdims=True)
        gamma = params['gamma'][0, :n_classes].reshape(1, 1, n_classes, 1, 1)
        beta = params['beta'][0, :n_classes].reshape(1, 1, n_classes, 1, 1)
        return jnp.maximum((y - mean) * lax.rsqrt(var + eps) * gamma + beta, 0.0)

    return params, forward, reference


if __name__ == "__main__":
    key = jax.random.PRNGKey(0)
    pkey, xkey = jax.random.split(key)
    params, forward, reference = make_spatio_temporal_model(pkey)

    T, B, C_in, H, W = 2, 2, 1, 16, 16
    x = jax.random.normal(xkey, (T, B, C_in, H, W), jnp.float32)

    out, state, acts = forward(x, params)
    out = jax.block_until_ready(out)

    # 16 -> pool 8 -> pool 4 -> pool 2 -> ConvTranspose2d(5) -> 6
    assert out.shape == (T, B, 3, 6, 6), out.shape
    assert bool(jnp.all(jnp.isfinite(out)))

    # Validate the fused Pallas kernel against a pure-JAX mirror of its math.
    out_ref = reference(x, params)
    max_err = float(jnp.max(jnp.abs(out - out_ref)))
    assert max_err < 1e-2, max_err

    print("KERNEL_OK")
</pallas_src>

<mosaic_0001>
module attributes {stable_mosaic.version = 11 : i64} {
  func.func @_fused_forward_kernel(%arg0: i32, %arg1: memref<1x8x256xf32, #tpu.memory_space<vmem>>, %arg2: memref<256x512xbf16, #tpu.memory_space<vmem>>, %arg3: memref<512x128xbf16, #tpu.memory_space<vmem>>, %arg4: memref<128x128xbf16, #tpu.memory_space<vmem>>, %arg5: memref<128x128xbf16, #tpu.memory_space<vmem>>, %arg6: memref<1x128xf32, #tpu.memory_space<vmem>>, %arg7: memref<1x128xf32, #tpu.memory_space<vmem>>, %arg8: memref<1x128xf32, #tpu.memory_space<vmem>>, %arg9: memref<128x128xf32, #tpu.memory_space<vmem>>, %arg10: memref<128x128xf32, #tpu.memory_space<vmem>>, %arg11: memref<1x8x128xf32, #tpu.memory_space<vmem>>) attributes {dimension_semantics = [#tpu.dimension_semantics<parallel>], iteration_bounds = array<i64: 2>, scalar_prefetch = 0 : i64, scratch_operands = 0 : i64, tpu.core_type = #tpu.core_type<tc>, window_params = [{transform_indices = @transform_0, window_bounds = array<i64: 1, 8, 256>}, {pipeline_mode = #tpu.pipeline_mode<synchronous>, transform_indices = @transform_1, window_bounds = array<i64: 256, 512>}, {pipeline_mode = #tpu.pipeline_mode<synchronous>, transform_indices = @transform_2, window_bounds = array<i64: 512, 128>}, {pipeline_mode = #tpu.pipeline_mode<synchronous>, transform_indices = @transform_3, window_bounds = array<i64: 128, 128>}, {pipeline_mode = #tpu.pipeline_mode<synchronous>, transform_indices = @transform_4, window_bounds = array<i64: 128, 128>}, {pipeline_mode = #tpu.pipeline_mode<synchronous>, transform_indices = @transform_5, window_bounds = array<i64: 1, 128>}, {pipeline_mode = #tpu.pipeline_mode<synchronous>, transform_indices = @transform_6, window_bounds = array<i64: 1, 128>}, {pipeline_mode = #tpu.pipeline_mode<synchronous>, transform_indices = @transform_7, window_bounds = array<i64: 1, 128>}, {pipeline_mode = #tpu.pipeline_mode<synchronous>, transform_indices = @transform_8, window_bounds = array<i64: 128, 128>}, {pipeline_mode = #tpu.pipeline_mode<synchronous>, transform_indices = @transform_9, window_bounds = array<i64: 128, 128>}, {transform_indices = @transform_10, window_bounds = array<i64: 1, 8, 128>}]} {
    %c0 = arith.constant 0 : index
    %c0_0 = arith.constant 0 : index
    %c0_1 = arith.constant 0 : index
    %0 = vector.load %arg1[%c0, %c0_0, %c0_1] : memref<1x8x256xf32, #tpu.memory_space<vmem>>, vector<1x8x256xf32>
    %1 = vector.shape_cast %0 : vector<1x8x256xf32> to vector<8x256xf32>
    %2 = arith.truncf %1 : vector<8x256xf32> to vector<8x256xbf16>
    %c0_2 = arith.constant 0 : index
    %c0_3 = arith.constant 0 : index
    %3 = vector.load %arg2[%c0_2, %c0_3] : memref<256x512xbf16, #tpu.memory_space<vmem>>, vector<256x512xbf16>
    %cst = arith.constant dense<0.000000e+00> : vector<8x512xf32>
    %4 = tpu.matmul %2, %3, %cst {dimension_numbers = #tpu.dot_dimension_numbers<[1], [0], [0], [1], [0, 0, 1, 1], [], []>} : vector<8x256xbf16>, vector<256x512xbf16>, vector<8x512xf32> -> vector<8x512xf32>
    %cst_4 = arith.constant 0.000000e+00 : f32
    %5 = vector.broadcast %cst_4 : f32 to vector<8x512xf32>
    %6 = arith.maximumf %4, %5 : vector<8x512xf32>
    %7 = arith.truncf %6 : vector<8x512xf32> to vector<8x512xbf16>
    %c0_5 = arith.constant 0 : index
    %c0_6 = arith.constant 0 : index
    %8 = vector.load %arg3[%c0_5, %c0_6] : memref<512x128xbf16, #tpu.memory_space<vmem>>, vector<512x128xbf16>
    %cst_7 = arith.constant dense<0.000000e+00> : vector<8x128xf32>
    %9 = tpu.matmul %7, %8, %cst_7 {dimension_numbers = #tpu.dot_dimension_numbers<[1], [0], [0], [1], [0, 0, 1, 1], [], []>} : vector<8x512xbf16>, vector<512x128xbf16>, vector<8x128xf32> -> vector<8x128xf32>
    %cst_8 = arith.constant 0.000000e+00 : f32
    %10 = vector.broadcast %cst_8 : f32 to vector<8x128xf32>
    %11 = arith.maximumf %9, %10 : vector<8x128xf32>
    %12 = arith.truncf %11 : vector<8x128xf32> to vector<8x128xbf16>
    %c0_9 = arith.constant 0 : index
    %c0_10 = arith.constant 0 : index
    %13 = vector.load %arg4[%c0_9, %c0_10] : memref<128x128xbf16, #tpu.memory_space<vmem>>, vector<128x128xbf16>
    %cst_11 = arith.constant dense<0.000000e+00> : vector<8x128xf32>
    %14 = tpu.matmul %12, %13, %cst_11 {dimension_numbers = #tpu.dot_dimension_numbers<[1], [0], [0], [1], [0, 0, 1, 1], [], []>} : vector<8x128xbf16>, vector<128x128xbf16>, vector<8x128xf32> -> vector<8x128xf32>
    %15 = arith.truncf %14 : vector<8x128xf32> to vector<8x128xbf16>
    %c0_12 = arith.constant 0 : index
    %c0_13 = arith.constant 0 : index
    %16 = vector.load %arg5[%c0_12, %c0_13] : memref<128x128xbf16, #tpu.memory_space<vmem>>, vector<128x128xbf16>
    %cst_14 = arith.constant dense<0.000000e+00> : vector<8x128xf32>
    %17 = tpu.matmul %15, %16, %cst_14 {dimension_numbers = #tpu.dot_dimension_numbers<[1], [0], [0], [1], [0, 0, 1, 1], [], []>} : vector<8x128xbf16>, vector<128x128xbf16>, vector<8x128xf32> -> vector<8x128xf32>
    %c0_15 = arith.constant 0 : index
    %c0_16 = arith.constant 0 : index
    %18 = vector.load %arg6[%c0_15, %c0_16] : memref<1x128xf32, #tpu.memory_space<vmem>>, vector<1x128xf32>
    %19 = vector.broadcast %18 : vector<1x128xf32> to vector<8x128xf32>
    %20 = arith.addf %17, %19 : vector<8x128xf32>
    %21 = tpu.iota {dimensions = array<i32: 0>} : vector<8x128xi32>
    %c2_i32 = arith.constant 2 : i32
    %22 = vector.broadcast %c2_i32 : i32 to vector<8x128xi32>
    %23 = arith.cmpi slt, %21, %22 : vector<8x128xi32>
    %cst_17 = arith.constant 0.000000e+00 : f32
    %24 = vector.broadcast %cst_17 : f32 to vector<8x128xf32>
    %25 = arith.select %23, %20, %24 : vector<8x128xi1>, vector<8x128xf32>
    %c0_18 = arith.constant 0 : index
    %c0_19 = arith.constant 0 : index
    %26 = vector.load %arg9[%c0_18, %c0_19] : memref<128x128xf32, #tpu.memory_space<vmem>>, vector<128x128xf32>
    %cst_20 = arith.constant dense<0.000000e+00> : vector<8x128xf32>
    %27 = tpu.matmul %25, %26, %cst_20 {dimension_numbers = #tpu.dot_dimension_numbers<[1], [0], [0], [1], [0, 0, 1, 1], [], []>} : vector<8x128xf32>, vector<128x128xf32>, vector<8x128xf32> -> vector<8x128xf32>
    %28 = arith.mulf %25, %25 : vector<8x128xf32>
    %cst_21 = arith.constant dense<0.000000e+00> : vector<8x128xf32>
    %29 = tpu.matmul %28, %26, %cst_21 {dimension_numbers = #tpu.dot_dimension_numbers<[1], [0], [0], [1], [0, 0, 1, 1], [], []>} : vector<8x128xf32>, vector<128x128xf32>, vector<8x128xf32> -> vector<8x128xf32>
    %cst_22 = arith.constant dense<0.000000e+00> : vector<128xf32>
    %30 = vector.multi_reduction <add>, %27, %cst_22 [0] : vector<8x128xf32> to vector<128xf32>
    %31 = vector.shape_cast %30 : vector<128xf32> to vector<1x128xf32>
    %cst_23 = arith.constant 0.013888889 : f32
    %32 = vector.broadcast %cst_23 : f32 to vector<1x128xf32>
    %33 = arith.mulf %31, %32 : vector<1x128xf32>
    %cst_24 = arith.constant dense<0.000000e+00> : vector<128xf32>
    %34 = vector.multi_reduction <add>, %29, %cst_24 [0] : vector<8x128xf32> to vector<128xf32>
    %35 = vector.shape_cast %34 : vector<128xf32> to vector<1x128xf32>
    %cst_25 = arith.constant 0.013888889 : f32
    %36 = vector.broadcast %cst_25 : f32 to vector<1x128xf32>
    %37 = arith.mulf %35, %36 : vector<1x128xf32>
    %38 = arith.mulf %33, %33 : vector<1x128xf32>
    %39 = arith.subf %37, %38 : vector<1x128xf32>
    %c0_26 = arith.constant 0 : index
    %c0_27 = arith.constant 0 : index
    %40 = vector.load %arg7[%c0_26, %c0_27] : memref<1x128xf32, #tpu.memory_space<vmem>>, vector<1x128xf32>
    %cst_28 = arith.constant 9.99999974E-6 : f32
    %41 = vector.broadcast %cst_28 : f32 to vector<1x128xf32>
    %42 = arith.addf %39, %41 : vector<1x128xf32>
    %43 = math.rsqrt %42 : vector<1x128xf32>
    %44 = arith.mulf %40, %43 : vector<1x128xf32>
    %c0_29 = arith.constant 0 : index
    %c0_30 = arith.constant 0 : index
    %45 = vector.load %arg8[%c0_29, %c0_30] : memref<1x128xf32, #tpu.memory_space<vmem>>, vector<1x128xf32>
    %46 = arith.mulf %33, %44 : vector<1x128xf32>
    %47 = arith.subf %45, %46 : vector<1x128xf32>
    %48 = vector.shape_cast %44 : vector<1x128xf32> to vector<1x128xf32>
    %49 = vector.broadcast %48 : vector<1x128xf32> to vector<8x128xf32>
    %50 = vector.shape_cast %47 : vector<1x128xf32> to vector<1x128xf32>
    %51 = vector.broadcast %50 : vector<1x128xf32> to vector<8x128xf32>
    %c0_31 = arith.constant 0 : index
    %c0_32 = arith.constant 0 : index
    %52 = vector.load %arg10[%c0_31, %c0_32] : memref<128x128xf32, #tpu.memory_space<vmem>>, vector<128x128xf32>
    %cst_33 = arith.constant dense<0.000000e+00> : vector<8x128xf32>
    %53 = tpu.matmul %49, %52, %cst_33 {dimension_numbers = #tpu.dot_dimension_numbers<[1], [0], [0], [1], [0, 0, 1, 1], [], []>} : vector<8x128xf32>, vector<128x128xf32>, vector<8x128xf32> -> vector<8x128xf32>
    %c0_34 = arith.constant 0 : index
    %c0_35 = arith.constant 0 : index
    %54 = vector.load %arg10[%c0_34, %c0_35] : memref<128x128xf32, #tpu.memory_space<vmem>>, vector<128x128xf32>
    %cst_36 = arith.constant dense<0.000000e+00> : vector<8x128xf32>
    %55 = tpu.matmul %51, %54, %cst_36 {dimension_numbers = #tpu.dot_dimension_numbers<[1], [0], [0], [1], [0, 0, 1, 1], [], []>} : vector<8x128xf32>, vector<128x128xf32>, vector<8x128xf32> -> vector<8x128xf32>
    %56 = arith.mulf %25, %53 : vector<8x128xf32>
    %57 = arith.addf %56, %55 : vector<8x128xf32>
    %cst_37 = arith.constant 0.000000e+00 : f32
    %58 = vector.broadcast %cst_37 : f32 to vector<8x128xf32>
    %59 = arith.maximumf %57, %58 : vector<8x128xf32>
    %c0_38 = arith.constant 0 : index
    %c0_39 = arith.constant 0 : index
    %c0_40 = arith.constant 0 : index
    %60 = vector.load %arg11[%c0_38, %c0_39, %c0_40] : memref<1x8x128xf32, #tpu.memory_space<vmem>>, vector<1x8x128xf32>
    %61 = vector.shape_cast %60 : vector<1x8x128xf32> to vector<8x128xf32>
    %62 = vector.shape_cast %59 : vector<8x128xf32> to vector<1x8x128xf32>
    tpu.vector_store %arg11[%c0_38, %c0_39, %c0_40], %62 {strides = array<i32>} : memref<1x8x128xf32, #tpu.memory_space<vmem>>, vector<1x8x128xf32>,
    return
  }
  func.func @transform_0(%arg0: i32) -> (i32, i32, i32) {
    %c0_i32 = arith.constant 0 : i32
    %c0_i32_0 = arith.constant 0 : i32
    %c0_i32_1 = arith.constant 0 : i32
    return %arg0, %c0_i32, %c0_i32_0 : i32, i32, i32
  }
  func.func @transform_1(%arg0: i32) -> (i32, i32) {
    %c0_i32 = arith.constant 0 : i32
    %c0_i32_0 = arith.constant 0 : i32
    %c0_i32_1 = arith.constant 0 : i32
    return %c0_i32, %c0_i32_0 : i32, i32
  }
  func.func @transform_2(%arg0: i32) -> (i32, i32) {
    %c0_i32 = arith.constant 0 : i32
    %c0_i32_0 = arith.constant 0 : i32
    %c0_i32_1 = arith.constant 0 : i32
    return %c0_i32, %c0_i32_0 : i32, i32
  }
  func.func @transform_3(%arg0: i32) -> (i32, i32) {
    %c0_i32 = arith.constant 0 : i32
    %c0_i32_0 = arith.constant 0 : i32
    %c0_i32_1 = arith.constant 0 : i32
    return %c0_i32, %c0_i32_0 : i32, i32
  }
  func.func @transform_4(%arg0: i32) -> (i32, i32) {
    %c0_i32 = arith.constant 0 : i32
    %c0_i32_0 = arith.constant 0 : i32
    %c0_i32_1 = arith.constant 0 : i32
    return %c0_i32, %c0_i32_0 : i32, i32
  }
  func.func @transform_5(%arg0: i32) -> (i32, i32) {
    %c0_i32 = arith.constant 0 : i32
    %c0_i32_0 = arith.constant 0 : i32
    %c0_i32_1 = arith.constant 0 : i32
    return %c0_i32, %c0_i32_0 : i32, i32
  }
  func.func @transform_6(%arg0: i32) -> (i32, i32) {
    %c0_i32 = arith.constant 0 : i32
    %c0_i32_0 = arith.constant 0 : i32
    %c0_i32_1 = arith.constant 0 : i32
    return %c0_i32, %c0_i32_0 : i32, i32
  }
  func.func @transform_7(%arg0: i32) -> (i32, i32) {
    %c0_i32 = arith.constant 0 : i32
    %c0_i32_0 = arith.constant 0 : i32
    %c0_i32_1 = arith.constant 0 : i32
    return %c0_i32, %c0_i32_0 : i32, i32
  }
  func.func @transform_8(%arg0: i32) -> (i32, i32) {
    %c0_i32 = arith.constant 0 : i32
    %c0_i32_0 = arith.constant 0 : i32
    %c0_i32_1 = arith.constant 0 : i32
    return %c0_i32, %c0_i32_0 : i32, i32
  }
  func.func @transform_9(%arg0: i32) -> (i32, i32) {
    %c0_i32 = arith.constant 0 : i32
    %c0_i32_0 = arith.constant 0 : i32
    %c0_i32_1 = arith.constant 0 : i32
    return %c0_i32, %c0_i32_0 : i32, i32
  }
  func.func @transform_10(%arg0: i32) -> (i32, i32, i32) {
    %c0_i32 = arith.constant 0 : i32
    %c0_i32_0 = arith.constant 0 : i32
    %c0_i32_1 = arith.constant 0 : i32
    return %arg0, %c0_i32, %c0_i32_0 : i32, i32, i32
  }
}

</mosaic_0001>

<bundles_post_ra>
// kernel: _forward_core.1
= control target key start
LH: loop header
LB: loop body
LE: loop exit
PB: predicated region body
PF: predicated region fallthrough
CT: control target
= control target key end

     0   :  { %15 = vsyncpa [#allocation3], 0  ;;  %s3219_s0 = inlined_call_operand.vmem [shape: f32[2,8,256], index: 0, kind: input, shape index: {}]   ;;  %s3220_s1 = inlined_call_operand.hbm [shape: bf16[256,512], index: 1, kind: input, shape index: {}]   ;;  %s3221_s2 = inlined_call_operand.hbm [shape: bf16[512,128], index: 2, kind: input, shape index: {}]   ;;  %s3222_s3 = inlined_call_operand.hbm [shape: bf16[128,128], index: 3, kind: input, shape index: {}]   ;;  %s3223_s4 = inlined_call_operand.hbm [shape: bf16[128,128], index: 4, kind: input, shape index: {}]   ;;  %s3224_s5 = inlined_call_operand.vmem [shape: f32[1,128], index: 5, kind: input, shape index: {}]   ;;  %s3225_s6 = inlined_call_operand.hbm [shape: f32[1,128], index: 6, kind: input, shape index: {}]   ;;  %s3226_s7 = inlined_call_operand.hbm [shape: f32[1,128], index: 7, kind: input, shape index: {}]   ;;  %s3227_s8 = inlined_call_operand.hbm [shape: f32[128,128], index: 8, kind: input, shape index: {}]   ;;  %s3228_s9 = inlined_call_operand.vmem [shape: f32[128,128], index: 9, kind: input, shape index: {}]   ;;  %s3229_s10 = inlined_call_operand.vmem [shape: f32[2,8,128], index: 10, kind: output, shape index: {}]  }
   0x1   :  { %16 = vsyncpa [#allocation5], 0 }
   0x2   :  { %17 = vsyncpa [#allocation8], 0 }
   0x3   :  { %18 = vsyncpa [#allocation11], 0  ;;  %s2925_s13 = smov 0  }
   0x4 LB: > { %s2855_s14 = smov [#allocation4]   ;;  %s2931_s16 = sadd.s32 4294967295, %s2853_s13   ;;  %s2853_s13 = sphi %s2925_s13, %s24_s13  }
   0x5   : > { %s295_s15 = sshll.u32 %s2855_s14, 4  ;;  %p1969_p0 = scmp.ge.s32.totalorder %s2853_s13, 1  ;;  %s296_s15 = int_to_ptr.vmem [resolvable:$true] %s295_s15 }
   0x6   : > { %p270_p1 = scmp.lt.s32.totalorder %s2853_s13, 3  ;;  %p2466_p2 = scmp.eq.s32.totalorder %s2931_s16, 0 }
   0x7   : > { %s2856_s18 = smov [#allocation7]   ;;  %s2857_s21 = smov [#allocation10]  }
   0x8   : > { %p2936_p3 = pnand %p1969_p0, %p270_p1  ;;  %s321_s19 = sshll.u32 %s2856_s18, 4  ;;  %s2942_s19 = int_to_ptr.vmem [resolvable:$true] %s321_s19 }
   0x9   : > { %s349_s22 = sshll.u32 %s2857_s21, 4  ;;  %s2858_s23 = smov [#allocation2]   ;;  %s2950_s22 = int_to_ptr.vmem [resolvable:$true] %s349_s22 }
   0xa   : > { %p2444_p4 = pneg %p2936_p3  ;;  %s2952_s24 = sshll.u32 %s2858_s23, 4  ;;  %s283_s24 = int_to_ptr.vmem [resolvable:$true] %s2952_s24 }
   0xb   : > { %s2660_s26 = scalar_lea.vmem %s296_s15, 4096  ;;  %p2668_p10 = scmp.lt.s32.totalorder %s296_s15, %s296_s15 }
   0xc   : > { %p2946_p5 = pnand %p2466_p2, %p2444_p4  ;;  %p2661_p7 = scmp.ne.s32.totalorder %s296_s15, %s2660_s26 }
   0xd   : > { %p2669_p11 = scmp.lt.s32.totalorder %s2660_s26, %s2660_s26 }
   0xe   : > { %p2956_p6 = pneg %p2946_p5 }
   0xf   : > { %p2670_p12 = por %p2669_p11, %p2668_p10 }
  0x10   : > { %p2663_p8 = pnand %p2661_p7, %p2956_p6 }
  0x12   : > { %p2664_p9 = pneg %p2663_p8 }
  0x14   : > { %p2671_p13 = pnand %p2670_p12, %p2664_p9 }
  0x16   : > { %2674 = shalt.err (!%p2671_p13)
}
  0x17   : > { %s2859_s27 = smov 64   ;;  %s2860_s28 = smov 4  }
  0x18   : > { %2450 = dma.hbm_to_vmem [thread:$0]  (!%p2946_p5), %s3221_s2, 4096, %s296_s15, [#allocation5], %s2859_s27, %s2859_s27, %s2860_s28  }
  0x19   : > { %s2686_s11 = scalar_lea.vmem %s2942_s19, 1024  ;;  %p2694_p7 = scmp.lt.s32.totalorder %s2942_s19, %s2942_s19 }
  0x1a   : > { %p2687_p0 = scmp.ne.s32.totalorder %s2942_s19, %s2686_s11  ;;  %p2695_p8 = scmp.lt.s32.totalorder %s2686_s11, %s2686_s11 }
  0x1c   : > { %p2689_p1 = pnand %p2687_p0, %p2956_p6  ;;  %p2696_p9 = por %p2695_p8, %p2694_p7 }
  0x1e   : > { %p2690_p4 = pneg %p2689_p1 }
  0x20   : > { %p2697_p10 = pnand %p2696_p9, %p2690_p4 }
  0x22   : > { %2700 = shalt.err (!%p2697_p10)
}
  0x23   : > { %2456 = dma.hbm_to_vmem [thread:$0]  (!%p2946_p5), %s3223_s4, 1024, %s2942_s19, [#allocation8], %s2859_s27, %s2859_s27, %s2860_s28  }
  0x24   : > { %s2712_s15 = scalar_lea.vmem %s2950_s22, 16  ;;  %s2719_s18 = scalar_lea.vmem %s2950_s22, 32 }
  0x25   : > { %p2713_p11 = scmp.ne.s32.totalorder %s2950_s22, %s2712_s15  ;;  %p2720_p0 = scmp.lt.s32.totalorder %s2950_s22, %s2950_s22 }
  0x26   : > { %p2721_p1 = scmp.lt.s32.totalorder %s2719_s18, %s2712_s15 }
  0x27   : > { %p2715_p12 = pnand %p2713_p11, %p2956_p6 }
  0x28   : > { %p2722_p4 = por %p2721_p1, %p2720_p0 }
  0x29   : > { %p2716_p13 = pneg %p2715_p12 }
  0x2b   : > { %p2723_p7 = pnand %p2722_p4, %p2716_p13 }
  0x2d   : > { %2726 = shalt.err (!%p2723_p7)
}
  0x2e   : > { %2462 = dma.hbm_to_vmem [thread:$0]  (!%p2946_p5), %s3226_s7, 16, %s2950_s22, [#allocation11]  }
  0x2f   : > { %s2738_s19 = scalar_lea.vmem %s283_s24, 8192  ;;  %p2746_p11 = scmp.lt.s32.totalorder %s283_s24, %s283_s24 }
  0x30   : > { %p2739_p8 = scmp.ne.s32.totalorder %s283_s24, %s2738_s19  ;;  %p2747_p12 = scmp.lt.s32.totalorder %s2738_s19, %s2738_s19 }
  0x32   : > { %p2741_p9 = pnand %p2739_p8, %p2956_p6  ;;  %p2748_p0 = por %p2747_p12, %p2746_p11 }
  0x34   : > { %p2742_p10 = pneg %p2741_p9 }
  0x36   : > { %p2749_p13 = pnand %p2748_p0, %p2742_p10 }
  0x38   : > { %2752 = shalt.err (!%p2749_p13)
}
  0x39   : > { %s2861_s26 = smov 256   ;;  %s2862_s29 = smov 16  }
  0x3a   : > { %2447 = dma.hbm_to_vmem [thread:$0]  (!%p2946_p5), %s3220_s1, 8192, %s283_s24, [#allocation3], %s2861_s26, %s2861_s26, %s2862_s29  }
  0x3b   : > { %s2863_s22 = smov [#allocation6]   ;;  %s2864_s14 = smov [#allocation9]  }
  0x3c   : > { %s308_s12 = sshll.u32 %s2863_s22, 4  ;;  %s338_s15 = sshll.u32 %s2864_s14, 4  ;;  %s309_s12 = int_to_ptr.vmem [resolvable:$true] %s308_s12  ;;  %s339_s15 = int_to_ptr.vmem [resolvable:$true] %s338_s15 }
  0x3d   : > { %s2764_s18 = scalar_lea.vmem %s309_s12, 1024  ;;  %p2772_p8 = scmp.lt.s32.totalorder %s309_s12, %s309_s12 }
  0x3e   : > { %p2765_p1 = scmp.ne.s32.totalorder %s309_s12, %s2764_s18  ;;  %p2773_p9 = scmp.lt.s32.totalorder %s2764_s18, %s2764_s18 }
  0x40   : > { %p2767_p4 = pnand %p2765_p1, %p2956_p6  ;;  %p2774_p10 = por %p2773_p9, %p2772_p8 }
  0x42   : > { %p2768_p7 = pneg %p2767_p4 }
  0x44   : > { %p2775_p11 = pnand %p2774_p10, %p2768_p7 }
  0x46   : > { %2778 = shalt.err (!%p2775_p11)
}
  0x47   : > { %2453 = dma.hbm_to_vmem [thread:$0]  (!%p2946_p5), %s3222_s3, 1024, %s309_s12, [#allocation5], %s2859_s27, %s2859_s27, %s2860_s28  }
  0x48   : > { %s2790_s23 = scalar_lea.vmem %s339_s15, 16  ;;  %s2797_s19 = scalar_lea.vmem %s339_s15, 32 }
  0x49   : > { %p2791_p12 = scmp.ne.s32.totalorder %s339_s15, %s2790_s23  ;;  %p2798_p1 = scmp.lt.s32.totalorder %s339_s15, %s339_s15 }
  0x4a   : > { %p2799_p4 = scmp.lt.s32.totalorder %s2797_s19, %s2790_s23 }
  0x4b   : > { %p2793_p0 = pnand %p2791_p12, %p2956_p6 }
  0x4c   : > { %p2800_p7 = por %p2799_p4, %p2798_p1 }
  0x4d   : > { %p2794_p13 = pneg %p2793_p0 }
  0x4f   : > { %p2801_p8 = pnand %p2800_p7, %p2794_p13 }
  0x51   : > { %2804 = shalt.err (!%p2801_p8)
}
  0x52   : > { %2459 = dma.hbm_to_vmem [thread:$0]  (!%p2946_p5), %s3225_s6, 16, %s339_s15, [#allocation8]  }
  0x53   : > { %s2865_s27 = smov [#allocation12]  }
  0x54   : > { %s359_s28 = sshll.u32 %s2865_s27, 4  ;;  %s360_s28 = int_to_ptr.vmem [resolvable:$true] %s359_s28 }
  0x55   : > { %s2816_s30 = scalar_lea.vmem %s360_s28, 2048  ;;  %p2824_p12 = scmp.lt.s32.totalorder %s360_s28, %s360_s28 }
  0x56   : > { %p2817_p9 = scmp.ne.s32.totalorder %s360_s28, %s2816_s30  ;;  %p2825_p0 = scmp.lt.s32.totalorder %s2816_s30, %s2816_s30 }
  0x58   : > { %p2819_p10 = pnand %p2817_p9, %p2956_p6  ;;  %p2826_p1 = por %p2825_p0, %p2824_p12 }
  0x5a   : > { %p2820_p11 = pneg %p2819_p10 }
  0x5c   : > { %p2827_p13 = pnand %p2826_p1, %p2820_p11 }
  0x5e   : > { %2830 = shalt.err (!%p2827_p13)
}
  0x5f   : > { %s2866_s11 = smov 128   ;;  %s2867_s22 = smov 8  }
  0x60   : > { %2465 = dma.hbm_to_vmem [thread:$0]  (!%p2946_p5), %s3227_s8, 2048, %s360_s28, [#allocation11], %s2866_s11, %s2866_s11, %s2867_s22  }
  0x61   : > { %386 = sbr.rel (%p2936_p3) target bundleno = 1401 (0x579), region = 60 }
  0x66   : > { %2836 = dma.done.wait (%p2466_p2), [#allocation3], 8192  }
  0x67   : > { %2838 = vsyncadd (%p2466_p2), [#allocation3], 4294959104 }
  0x68   : > { %2840 = dma.done.wait (%p2466_p2), [#allocation5], 5120  }
  0x69   : > { %2842 = vsyncadd (%p2466_p2), [#allocation5], 4294962176 }
  0x6a   : > { %2844 = dma.done.wait (%p2466_p2), [#allocation8], 1040  }
  0x6b   : > { %2846 = vsyncadd (%p2466_p2), [#allocation8], 4294966256 }
  0x6c   : > { %2848 = dma.done.wait (%p2466_p2), [#allocation11], 2064  }
  0x6d   : > { %2850 = vsyncadd (%p2466_p2), [#allocation11], 4294965232  ;;  %v2503_v0 = vld [vmem:[#allocation2 + $0xe4] ss:$16 sps:$4 sm:$0xff]   ;;  %v2505_v1 = vld [vmem:[#allocation2 + $0xec] ss:$16 sps:$4 sm:$0xff]  }
  0x6e   : > { %845 = vmatprep.subr.bf16.mxu0 %v2503_v0  ;;  %v2507_v2 = vld [vmem:[#allocation2 + $0xe0] ss:$16 sps:$4 sm:$0xff]   ;;  %v2508_v3 = vld [vmem:[#allocation2 + $0xe8] ss:$16 sps:$4 sm:$0xff]   ;;  %886 = vmatprep.subr.bf16.mxu1 %v2505_v1  ;;  %v2509_v4 = vld [vmem:[#allocation2 + $0xc4] ss:$16 sps:$4 sm:$0xff]  }
  0x6f   : > { %846 = vmatpush1.bf16.msra.mxu0 %v2507_v2  ;;  %887 = vmatpush1.bf16.msra.mxu1 %v2508_v3  ;;  %v2511_v5 = vld [vmem:[#allocation2 + $0xcc] ss:$16 sps:$4 sm:$0xff]   ;;  %v2513_v6 = vld [vmem:[#allocation2 + $0xc0] ss:$16 sps:$4 sm:$0xff]   ;;  %v2514_v7 = vld [vmem:[#allocation2 + $0xc8] ss:$16 sps:$4 sm:$0xff]  }
  0x70   : > { %847 = vmatprep.subr.bf16.mxu0 %v2509_v4  ;;  %888 = vmatprep.subr.bf16.mxu1 %v2511_v5  ;;  %v2515_v8 = vld [vmem:[#allocation2 + $0xa4] ss:$16 sps:$4 sm:$0xff]   ;;  %v2517_v9 = vld [vmem:[#allocation2 + $0xac] ss:$16 sps:$4 sm:$0xff]   ;;  %v2519_v10 = vld [vmem:[#allocation2 + $0xa0] ss:$16 sps:$4 sm:$0xff]  }
  0x71   : > { %v2520_v11 = vld [vmem:[#allocation2 + $0xa8] ss:$16 sps:$4 sm:$0xff]   ;;  %v2521_v12 = vld [vmem:[#allocation2 + $0x84] ss:$16 sps:$4 sm:$0xff]   ;;  %v2523_v13 = vld [vmem:[#allocation2 + $0x8c] ss:$16 sps:$4 sm:$0xff]  }
  0x72   : > { %v2525_v14 = vld [vmem:[#allocation2 + $0x80] ss:$16 sps:$4 sm:$0xff]   ;;  %v2526_v15 = vld [vmem:[#allocation2 + $0x88] ss:$16 sps:$4 sm:$0xff]   ;;  %v2527_v16 = vld [vmem:[#allocation2 + $0x64] ss:$16 sps:$4 sm:$0xff]  }
  0x73   : > { %848 = vmatpush1.bf16.msra.mxu0 %v2513_v6  ;;  %889 = vmatpush1.bf16.msra.mxu1 %v2514_v7  ;;  %v2529_v17 = vld [vmem:[#allocation2 + $0x6c] ss:$16 sps:$4 sm:$0xff]   ;;  %v2531_v18 = vld [vmem:[#allocation2 + $0x60] ss:$16 sps:$4 sm:$0xff]   ;;  %v2532_v19 = vld [vmem:[#allocation2 + $0x68] ss:$16 sps:$4 sm:$0xff]  }
  0x74   : > { %849 = vmatprep.subr.bf16.mxu0 %v2515_v8  ;;  %890 = vmatprep.subr.bf16.mxu1 %v2517_v9  ;;  %v2533_v20 = vld [vmem:[#allocation2 + $0x44] ss:$16 sps:$4 sm:$0xff]   ;;  %v2535_v21 = vld [vmem:[#allocation2 + $0x4c] ss:$16 sps:$4 sm:$0xff]   ;;  %v2537_v22 = vld [vmem:[#allocation2 + $0x40] ss:$16 sps:$4 sm:$0xff]  }
  0x75   : > { %v2538_v23 = vld [vmem:[#allocation2 + $0x48] ss:$16 sps:$4 sm:$0xff]   ;;  %v2539_v24 = vld [vmem:[#allocation2 + $0x24] ss:$16 sps:$4 sm:$0xff]   ;;  %v2541_v25 = vld [vmem:[#allocation2 + $0x2c] ss:$16 sps:$4 sm:$0xff]  }
  0x76   : > { %v2543_v26 = vld [vmem:[#allocation2 + $0x20] ss:$16 sps:$4 sm:$0xff]   ;;  %v2544_v27 = vld [vmem:[#allocation2 + $0x28] ss:$16 sps:$4 sm:$0xff]   ;;  %v2545_v28 = vld [vmem:[#allocation2 + $0x4] ss:$16 sps:$4 sm:$0xff]  }
  0x77   : > { %850 = vmatpush1.bf16.msra.mxu0 %v2519_v10  ;;  %891 = vmatpush1.bf16.msra.mxu1 %v2520_v11  ;;  %v2547_v29 = vld [vmem:[#allocation2 + $0xc] ss:$16 sps:$4 sm:$0xff]   ;;  %v2549_v30 = vld [vmem:[#allocation2] ss:$16 sps:$4 sm:$0xff]   ;;  %v2550_v31 = vld [vmem:[#allocation2 + $0x8] ss:$16 sps:$4 sm:$0xff]  }
  0x78   : > { %851 = vmatprep.subr.bf16.mxu0 %v2521_v12  ;;  %892 = vmatprep.subr.bf16.mxu1 %v2523_v13  ;;  %v2551_v32 = vld [vmem:[#allocation2 + $0x1e4] ss:$16 sps:$4 sm:$0xff]   ;;  %v2553_v33 = vld [vmem:[#allocation2 + $0x1ec] ss:$16 sps:$4 sm:$0xff]   ;;  %p447_p2 = scmp.lt.s32.totalorder %s2931_s16, 1  ;;  %vm2869_vm0 = vmmov 0  }
  0x79   : > { %v2555_v34 = vld [vmem:[#allocation2 + $0x1e0] ss:$16 sps:$4 sm:$0xff]   ;;  %v2556_v35 = vld [vmem:[#allocation2 + $0x1e8] ss:$16 sps:$4 sm:$0xff]   ;;  %v2557_v36 = vld [vmem:[#allocation2 + $0x1c4] ss:$16 sps:$4 sm:$0xff]  }
  0x7a   : > { %v2559_v37 = vld [vmem:[#allocation2 + $0x1cc] ss:$16 sps:$4 sm:$0xff]   ;;  %s3234_s16 = smov (!%p447_p2, %s2931_s16), 1  ;;  %v2561_v38 = vld [vmem:[#allocation2 + $0x1c0] ss:$16 sps:$4 sm:$0xff]  }
  0x7b   : > { %852 = vmatpush1.bf16.msra.mxu0 %v2525_v14  ;;  %893 = vmatpush1.bf16.msra.mxu1 %v2526_v15  ;;  %v2562_v39 = vld [vmem:[#allocation2 + $0x1c8] ss:$16 sps:$4 sm:$0xff]   ;;  %v2563_v40 = vld [vmem:[#allocation2 + $0x1a4] ss:$16 sps:$4 sm:$0xff]   ;;  %v2565_v41 = vld [vmem:[#allocation2 + $0x1ac] ss:$16 sps:$4 sm:$0xff]  }
  0x7c   : > { %853 = vmatprep.subr.bf16.mxu0 %v2527_v16  ;;  %894 = vmatprep.subr.bf16.mxu1 %v2529_v17  ;;  %s2105_s17 = sshll.u32 %s3234_s16, 4  ;;  %v2567_v42 = vld [vmem:[#allocation2 + $0x1a0] ss:$16 sps:$4 sm:$0xff]   ;;  %v2568_v43 = vld [vmem:[#allocation2 + $0x1a8] ss:$16 sps:$4 sm:$0xff]   ;;  %s1988_s25 = sshll.u32 %s3234_s16, 3 }
  0x7d   : > { %v2569_v44 = vld [vmem:[#allocation2 + $0x184] ss:$16 sps:$4 sm:$0xff]   ;;  %s3056_s15 = scalar_lea.vmem %s3219_s0, %s2105_s17  ;;  %v2571_v45 = vld [vmem:[#allocation2 + $0x18c] ss:$16 sps:$4 sm:$0xff]   ;;  %v2573_v46 = vld [vmem:[#allocation2 + $0x180] ss:$16 sps:$4 sm:$0xff]   ;;  %s455_s24 = scalar_lea.vmem %s3229_s10, %s1988_s25 }
  0x7e   : > { %v2574_v47 = vld [vmem:[#allocation2 + $0x188] ss:$16 sps:$4 sm:$0xff]   ;;  %v2575_v49 = vld [vmem:[#allocation2 + $0x164] ss:$16 sps:$4 sm:$0xff]   ;;  %v2577_v51 = vld [vmem:[#allocation2 + $0x16c] ss:$16 sps:$4 sm:$0xff]  }
  0x7f   : > { %854 = vmatpush1.bf16.msra.mxu0 %v2531_v18  ;;  %895 = vmatpush1.bf16.msra.mxu1 %v2532_v19  ;;  %v458_v48 = vld [vmem:[%s3056_s15 + $0x8] sm:$0xff]  ;;  %v2579_v52 = vld [vmem:[#allocation2 + $0x160] ss:$16 sps:$4 sm:$0xff]   ;;  %v2581_v54 = vld [vmem:[#allocation2 + $0x144] ss:$16 sps:$4 sm:$0xff]  }
  0x80   : > { %855 = vmatprep.subr.bf16.mxu0 %v2533_v20  ;;  %896 = vmatprep.subr.bf16.mxu1 %v2535_v21  ;;  %v460_v50 = vpack.c.bf16 %v458_v48, %v458_v48  ;;  %v2580_v53 = vld [vmem:[#allocation2 + $0x168] ss:$16 sps:$4 sm:$0xff]   ;;  %v2583_v55 = vld [vmem:[#allocation2 + $0x14c] ss:$16 sps:$4 sm:$0xff]   ;;  %v2585_v56 = vld [vmem:[#allocation2 + $0x140] ss:$16 sps:$4 sm:$0xff]  }
  0x81   : > { %v2586_v57 = vld [vmem:[#allocation2 + $0x148] ss:$16 sps:$4 sm:$0xff]   ;;  %v2587_v58 = vld [vmem:[#allocation2 + $0x124] ss:$16 sps:$4 sm:$0xff]   ;;  %v2589_v59 = vld [vmem:[#allocation2 + $0x12c] ss:$16 sps:$4 sm:$0xff]  }
  0x82   : > { %877 = vmatprep.mubr.bf16.mxu0 %v460_v50  ;;  %918 = vmatprep.mubr.bf16.mxu1 %v460_v50  ;;  %v2591_v60 = vld [vmem:[#allocation2 + $0x120] ss:$16 sps:$4 sm:$0xff]   ;;  %v2592_v61 = vld [vmem:[#allocation2 + $0x128] ss:$16 sps:$4 sm:$0xff]   ;;  %v2593_v62 = vld [vmem:[#allocation2 + $0x104] ss:$16 sps:$4 sm:$0xff]  }
  0x83   : > { %856 = vmatpush1.bf16.msra.mxu0 %v2537_v22  ;;  %897 = vmatpush1.bf16.msra.mxu1 %v2538_v23  ;;  %v2595_v63 = vld [vmem:[#allocation2 + $0x10c] ss:$16 sps:$4 sm:$0xff]   ;;  %v2597_v0 = vld [vmem:[#allocation2 + $0x100] ss:$16 sps:$4 sm:$0xff]   ;;  %v2598_v1 = vld [vmem:[#allocation2 + $0x108] ss:$16 sps:$4 sm:$0xff]  }
  0x84   : > { %857 = vmatprep.subr.bf16.mxu0 %v2539_v24  ;;  %898 = vmatprep.subr.bf16.mxu1 %v2541_v25  ;;  %v457_v2 = vld [vmem:[%s3056_s15] sm:$0xff]  ;;  %v2599_v3 = vld [vmem:[#allocation4 + $0x78] sm:$0xff]   ;;  %v2603_v8 = vld [vmem:[#allocation4 + $0x70] sm:$0xff]  }
  0x85   : > { %v2600_v4 = vld [vmem:[#allocation4 + $0xf8] sm:$0xff]   ;;  %v459_v6 = vpack.c.bf16 %v457_v2, %v457_v2  ;;  %v2604_v9 = vld [vmem:[#allocation4 + $0xf0] sm:$0xff]   ;;  %v2607_v12 = vld [vmem:[#allocation4 + $0x68] sm:$0xff]  }
  0x86   : > { %v2601_v5 = vld [vmem:[#allocation4 + $0x38] sm:$0xff]   ;;  %v2605_v10 = vld [vmem:[#allocation4 + $0x30] sm:$0xff]   ;;  %v2608_v13 = vld [vmem:[#allocation4 + $0xe8] sm:$0xff]  }
  0x87   : > { %858 = vmatpush1.bf16.msra.mxu0 %v2543_v26  ;;  %899 = vmatpush1.bf16.msra.mxu1 %v2544_v27  ;;  %v2602_v7 = vld [vmem:[#allocation4 + $0xb8] sm:$0xff]   ;;  %v2606_v11 = vld [vmem:[#allocation4 + $0xb0] sm:$0xff]   ;;  %v2609_v14 = vld [vmem:[#allocation4 + $0x28] sm:$0xff]  }
  0x88   : > { %859 = vmatprep.subr.bf16.mxu0 %v2545_v28  ;;  %900 = vmatprep.subr.bf16.mxu1 %v2547_v29  ;;  %v2610_v15 = vld [vmem:[#allocation4 + $0xa8] sm:$0xff]   ;;  %v2611_v16 = vld [vmem:[#allocation4 + $0x60] sm:$0xff]   ;;  %v2615_v20 = vld [vmem:[#allocation4 + $0x58] sm:$0xff]  }
  0x89   : > { %v2612_v17 = vld [vmem:[#allocation4 + $0xe0] sm:$0xff]   ;;  %v2616_v21 = vld [vmem:[#allocation4 + $0xd8] sm:$0xff]   ;;  %v2619_v24 = vld [vmem:[#allocation4 + $0x50] sm:$0xff]  }
  0x8a   : > { %v2613_v18 = vld [vmem:[#allocation4 + $0x20] sm:$0xff]   ;;  %v2617_v22 = vld [vmem:[#allocation4 + $0x18] sm:$0xff]   ;;  %v2620_v25 = vld [vmem:[#allocation4 + $0xd0] sm:$0xff]  }
  0x8b   : > { %860 = vmatpush1.bf16.msra.mxu0 %v2549_v30  ;;  %901 = vmatpush1.bf16.msra.mxu1 %v2550_v31  ;;  %v2614_v19 = vld [vmem:[#allocation4 + $0xa0] sm:$0xff]   ;;  %v2618_v23 = vld [vmem:[#allocation4 + $0x98] sm:$0xff]   ;;  %v2621_v26 = vld [vmem:[#allocation4 + $0x10] sm:$0xff]  }
  0x8c   : > { %861 = vmatprep.subr.bf16.mxu0 %v2551_v32  ;;  %902 = vmatprep.subr.bf16.mxu1 %v2553_v33  ;;  %v2622_v27 = vld [vmem:[#allocation4 + $0x90] sm:$0xff]   ;;  %v2623_v28 = vld [vmem:[#allocation4 + $0x48] sm:$0xff]   ;;  %v2627_v32 = vld [vmem:[#allocation4 + $0x40] sm:$0xff]  }
  0x8d   : > { %v2624_v29 = vld [vmem:[#allocation4 + $0xc8] sm:$0xff]   ;;  %v2628_v33 = vld [vmem:[#allocation4 + $0xc0] sm:$0xff]   ;;  %v2644_v2 = vld [vmem:[#allocation7 + $0x10] sm:$0xff]  }
  0x8e   : > { %v2625_v30 = vld [vmem:[#allocation4 + $0x8] sm:$0xff]  }
  0x8f   : > { %862 = vmatpush2.bf16.msra.mxu0 %v2555_v34  ;;  %903 = vmatpush2.bf16.msra.mxu1 %v2556_v35  ;;  %v2626_v31 = vld [vmem:[#allocation4 + $0x88] sm:$0xff]   ;;  %v2629_v34 = vld [vmem:[#allocation4] sm:$0xff]  }
  0x90   : > { %863 = vmatprep.subr.bf16.mxu0 %v2557_v36  ;;  %904 = vmatprep.subr.bf16.mxu1 %v2559_v37  ;;  %v2630_v35 = vld [vmem:[#allocation4 + $0x80] sm:$0xff]   ;;  %v2868_v36 = vmov 0.0  }
  0x93   : > { %864 = vmatpush2.bf16.msra.mxu0 %v2561_v38  ;;  %905 = vmatpush2.bf16.msra.mxu1 %v2562_v39 }
  0x94   : > { %865 = vmatprep.subr.bf16.mxu0 %v2563_v40  ;;  %906 = vmatprep.subr.bf16.mxu1 %v2565_v41 }
  0x97   : > { %866 = vmatpush2.bf16.msra.mxu0 %v2567_v42  ;;  %907 = vmatpush2.bf16.msra.mxu1 %v2568_v43 }
  0x98   : > { %867 = vmatprep.subr.bf16.mxu0 %v2569_v44  ;;  %908 = vmatprep.subr.bf16.mxu1 %v2571_v45 }
  0x9b   : > { %868 = vmatpush2.bf16.msra.mxu0 %v2573_v46  ;;  %909 = vmatpush2.bf16.msra.mxu1 %v2574_v47 }
  0x9c   : > { %869 = vmatprep.subr.bf16.mxu0 %v2575_v49  ;;  %910 = vmatprep.subr.bf16.mxu1 %v2577_v51  ;;  %v2631_v49 = vld [vmem:[#allocation6 + $0x38] sm:$0xff]  }
  0x9f   : > { %870 = vmatpush2.bf16.msra.mxu0 %v2579_v52  ;;  %911 = vmatpush2.bf16.msra.mxu1 %v2580_v53 }
  0xa0   : > { %871 = vmatprep.subr.bf16.mxu0 %v2581_v54  ;;  %912 = vmatprep.subr.bf16.mxu1 %v2583_v55  ;;  %v2632_v54 = vld [vmem:[#allocation6 + $0x30] sm:$0xff]   ;;  %v2633_v55 = vld [vmem:[#allocation6 + $0x28] sm:$0xff]  }
  0xa3   : > { %872 = vmatpush2.bf16.msra.mxu0 %v2585_v56  ;;  %913 = vmatpush2.bf16.msra.mxu1 %v2586_v57  ;;  %v2634_v56 = vld [vmem:[#allocation6 + $0x20] sm:$0xff]   ;;  %v2635_v57 = vld [vmem:[#allocation6 + $0x18] sm:$0xff]  }
  0xa4   : > { %873 = vmatprep.subr.bf16.mxu0 %v2587_v58  ;;  %914 = vmatprep.subr.bf16.mxu1 %v2589_v59  ;;  %v2636_v58 = vld [vmem:[#allocation6 + $0x10] sm:$0xff]   ;;  %v2637_v59 = vld [vmem:[#allocation6 + $0x8] sm:$0xff]  }
  0xa7   : > { %874 = vmatpush2.bf16.msra.mxu0 %v2591_v60  ;;  %915 = vmatpush2.bf16.msra.mxu1 %v2592_v61  ;;  %v2638_v60 = vld [vmem:[#allocation6] sm:$0xff]   ;;  %v2639_v61 = vld [vmem:[#allocation7 + $0x38] sm:$0xff]  }
  0xa8   : > { %875 = vmatprep.subr.bf16.mxu0 %v2593_v62  ;;  %916 = vmatprep.subr.bf16.mxu1 %v2595_v63  ;;  %v2640_v62 = vld [vmem:[#allocation7 + $0x30] sm:$0xff]   ;;  %v2641_v63 = vld [vmem:[#allocation7 + $0x28] sm:$0xff]  }
  0xab   : > { %876 = vmatpush2.bf16.msra.mxu0 %v2597_v0  ;;  %917 = vmatpush2.bf16.msra.mxu1 %v2598_v1  ;;  %v2642_v0 = vld [vmem:[#allocation7 + $0x20] sm:$0xff]   ;;  %v2643_v1 = vld [vmem:[#allocation7 + $0x18] sm:$0xff]  }
  0xac   : > { %2106 = vmatprep.subr.bf16.mxu0 %v2599_v3  ;;  %2128 = vmatprep.subr.bf16.mxu1 %v2600_v4  ;;  %v2645_v3 = vld [vmem:[#allocation7 + $0x8] sm:$0xff]  }
  0xae   : > { %878 = vmatmul.mubr.bf16.vlgmr.msra.gmra.mxu0 %v459_v6  ;;  %919 = vmatmul.mubr.bf16.vlgmr.msra.gmra.mxu1 %v459_v6 }
  0xaf   : > { %2107 = vmatpush3.bf16.msra.mxu0 %v2601_v5  ;;  %2129 = vmatpush3.bf16.msra.mxu1 %v2602_v7 }
  0xb0   : > { %2108 = vmatprep.subr.bf16.mxu0 %v2603_v8  ;;  %2130 = vmatprep.subr.bf16.mxu1 %v2604_v9 }
  0xb3   : > { %2109 = vmatpush3.bf16.msra.mxu0 %v2605_v10  ;;  %2131 = vmatpush3.bf16.msra.mxu1 %v2606_v11 }
  0xb4   : > { %2110 = vmatprep.subr.bf16.mxu0 %v2607_v12  ;;  %2132 = vmatprep.subr.bf16.mxu1 %v2608_v13 }
  0xb7   : > { %2111 = vmatpush3.bf16.msra.mxu0 %v2609_v14  ;;  %2133 = vmatpush3.bf16.msra.mxu1 %v2610_v15 }
  0xb8   : > { %2112 = vmatprep.subr.bf16.mxu0 %v2611_v16  ;;  %2134 = vmatprep.subr.bf16.mxu1 %v2612_v17  ;;  %v2646_v17 = vld [vmem:[#allocation7] sm:$0xff]  }
  0xbb   : > { %2113 = vmatpush3.bf16.msra.mxu0 %v2613_v18  ;;  %2135 = vmatpush3.bf16.msra.mxu1 %v2614_v19  ;;  %v1508_v18 = vld [vmem:[#allocation12 + $0x78] sm:$0xff]  ;;  %v1507_v19 = vld [vmem:[#allocation12 + $0x70] sm:$0xff] }
  0xbc   : > { %2114 = vmatprep.subr.bf16.mxu0 %v2615_v20  ;;  %2136 = vmatprep.subr.bf16.mxu1 %v2616_v21  ;;  %v1506_v20 = vld [vmem:[#allocation12 + $0x68] sm:$0xff]  ;;  %v1505_v21 = vld [vmem:[#allocation12 + $0x60] sm:$0xff] }
  0xbf   : > { %2115 = vmatpush3.bf16.msra.mxu0 %v2617_v22  ;;  %2137 = vmatpush3.bf16.msra.mxu1 %v2618_v23  ;;  %v1504_v22 = vld [vmem:[#allocation12 + $0x58] sm:$0xff]  ;;  %v1503_v23 = vld [vmem:[#allocation12 + $0x50] sm:$0xff] }
  0xc0   : > { %2116 = vmatprep.subr.bf16.mxu0 %v2619_v24  ;;  %2138 = vmatprep.subr.bf16.mxu1 %v2620_v25  ;;  %v1502_v24 = vld [vmem:[#allocation12 + $0x48] sm:$0xff]  ;;  %v1501_v25 = vld [vmem:[#allocation12 + $0x40] sm:$0xff] }
  0xc3   : > { %2117 = vmatpush3.bf16.msra.mxu0 %v2621_v26  ;;  %2139 = vmatpush3.bf16.msra.mxu1 %v2622_v27  ;;  %v1500_v26 = vld [vmem:[#allocation12 + $0x38] sm:$0xff]  ;;  %v1499_v27 = vld [vmem:[#allocation12 + $0x30] sm:$0xff] }
  0xc4   : > { %2118 = vmatprep.subr.bf16.mxu0 %v2623_v28  ;;  %2140 = vmatprep.subr.bf16.mxu1 %v2624_v29  ;;  %v1498_v28 = vld [vmem:[#allocation12 + $0x28] sm:$0xff]  ;;  %v1497_v29 = vld [vmem:[#allocation12 + $0x20] sm:$0xff] }
  0xc7   : > { %2119 = vmatpush3.bf16.msra.mxu0 %v2625_v30  ;;  %2141 = vmatpush3.bf16.msra.mxu1 %v2626_v31  ;;  %v1496_v30 = vld [vmem:[#allocation12 + $0x18] sm:$0xff]  ;;  %v1495_v31 = vld [vmem:[#allocation12 + $0x10] sm:$0xff] }
  0xc8   : > { %2120 = vmatprep.subr.bf16.mxu0 %v2627_v32  ;;  %2142 = vmatprep.subr.bf16.mxu1 %v2628_v33 }
  0xcb   : > { %2121 = vmatpush3.bf16.msra.mxu0 %v2629_v34  ;;  %2143 = vmatpush3.bf16.msra.mxu1 %v2630_v35 }
  0xcc   : > { %2236 = vmatprep.subr.bf16.mxu0 %v2868_v36  ;;  %2256 = vmatprep.subr.bf16.mxu1 %v2868_v36 }
 0x16e   : > { %v879_v37 = vpop.f32.mrf.mxu0  ;;  %v920_v38 = vpop.f32.mrf.mxu1 }
 0x16f   : > { %v927_v39 = vmax.f32 %v879_v37, 0.0  ;;  %v929_v40 = vmax.f32 %v920_v38, 0.0  ;;  %v1494_v38 = vld [vmem:[#allocation12 + $0x8] sm:$0xff] }
 0x170   : > { %v881_v41 = vpop.f32.mrf.mxu0  ;;  %v922_v42 = vpop.f32.mrf.mxu1 }
 0x171   : > { %v928_v43 = vmax.f32 %v881_v41, 0.0  ;;  %v930_v44 = vmax.f32 %v922_v42, 0.0  ;;  %v931_v50 = vpack.c.bf16 %v927_v39, %v927_v39  ;;  %v933_v51 = vpack.c.bf16 %v929_v40, %v929_v40  ;;  %v1493_v39 = vld [vmem:[#allocation12] sm:$0xff]  ;;  %v2093_v42 = vld [vmem:[%s3224_s5] ss:$0 sm:$0xff] }
 0x172   : > { %v883_v45 = vpop.f32.mrf.mxu0  ;;  %v924_v46 = vpop.f32.mrf.mxu1  ;;  %v1489_v40 = vlaneseq }
 0x173   : > { %v932_v47 = vpack.c.bf16 %v928_v43, %v928_v43  ;;  %v934_v48 = vpack.c.bf16 %v930_v44, %v930_v44 }
 0x174   : > { %v884_v52 = vpop.f32.mrf.mxu0  ;;  %v925_v53 = vpop.f32.mrf.mxu1  ;;  %v3118_v41 = vshrl.u32 %v1489_v40, 7 }
 0x175   : > { %1223 = vmatprep.mubr.bf16.mxu0 %v932_v47  ;;  %1263 = vmatprep.mubr.bf16.mxu1 %v934_v48  ;;  %v1698_v52 = vld [vmem:[%s3228_s9 + $0x68] sm:$0xff]  ;;  %v1697_v53 = vld [vmem:[%s3228_s9 + $0x60] sm:$0xff] }
 0x176   : > { %1224 = vmatmul.mubr.bf16.vlgmr.msra.gmra.mxu0 %v931_v50  ;;  %1264 = vmatmul.mubr.bf16.vlgmr.msra.gmra.mxu1 %v933_v51  ;;  %vm1491_vm1 = vcmp.lt.s32.totalorder %v3118_v41, 2  ;;  %v1700_v50 = vld [vmem:[%s3228_s9 + $0x78] sm:$0xff]  ;;  %v1699_v51 = vld [vmem:[%s3228_s9 + $0x70] sm:$0xff] }
 0x177   : > { %2237 = vmatpush3.bf16.msra.mxu0 %v2631_v49  ;;  %2252 = vmatprep.mubr.msk.bf16.mxu0 %vm2869_vm0, %v2868_v36 }
 0x178   : > { %2238 = vmatprep.subr.bf16.mxu0 %v2868_v36  ;;  %2272 = vmatprep.mubr.msk.bf16.mxu1 %vm2869_vm0, %v2868_v36 }
 0x179   : > { %2257 = vmatpush3.bf16.msra.mxu1 %v2639_v61  ;;  %v1689_v61 = vld [vmem:[%s3228_s9 + $0x20] sm:$0xff] }
 0x17a   : > { %2258 = vmatprep.subr.bf16.mxu1 %v2868_v36 }
 0x17b   : > { %2239 = vmatpush3.bf16.msra.mxu0 %v2632_v54  ;;  %v1696_v54 = vld [vmem:[%s3228_s9 + $0x58] sm:$0xff] }
 0x17c   : > { %2240 = vmatprep.subr.bf16.mxu0 %v2868_v36 }
 0x17d   : > { %2259 = vmatpush3.bf16.msra.mxu1 %v2640_v62  ;;  %v1688_v62 = vld [vmem:[%s3228_s9 + $0x18] sm:$0xff] }
 0x17e   : > { %2260 = vmatprep.subr.bf16.mxu1 %v2868_v36 }
 0x17f   : > { %2241 = vmatpush3.bf16.msra.mxu0 %v2633_v55  ;;  %v1695_v55 = vld [vmem:[%s3228_s9 + $0x50] sm:$0xff] }
 0x180   : > { %2242 = vmatprep.subr.bf16.mxu0 %v2868_v36 }
 0x181   : > { %2261 = vmatpush3.bf16.msra.mxu1 %v2641_v63  ;;  %v1687_v63 = vld [vmem:[%s3228_s9 + $0x10] sm:$0xff] }
 0x182   : > { %2262 = vmatprep.subr.bf16.mxu1 %v2868_v36 }
 0x183   : > { %2243 = vmatpush3.bf16.msra.mxu0 %v2634_v56  ;;  %v1694_v56 = vld [vmem:[%s3228_s9 + $0x48] sm:$0xff] }
 0x184   : > { %2244 = vmatprep.subr.bf16.mxu0 %v2868_v36 }
 0x185   : > { %2263 = vmatpush3.bf16.msra.mxu1 %v2642_v0  ;;  %v1686_v0 = vld [vmem:[%s3228_s9 + $0x8] sm:$0xff] }
 0x186   : > { %2264 = vmatprep.subr.bf16.mxu1 %v2868_v36 }
 0x187   : > { %2245 = vmatpush3.bf16.msra.mxu0 %v2635_v57  ;;  %v1693_v57 = vld [vmem:[%s3228_s9 + $0x40] sm:$0xff] }
 0x188   : > { %2246 = vmatprep.subr.bf16.mxu0 %v2868_v36 }
 0x189   : > { %2265 = vmatpush3.bf16.msra.mxu1 %v2643_v1  ;;  %v1685_v1 = vld [vmem:[%s3228_s9] sm:$0xff] }
 0x18a   : > { %2266 = vmatprep.subr.bf16.mxu1 %v2868_v36 }
 0x18b   : > { %2247 = vmatpush3.bf16.msra.mxu0 %v2636_v58  ;;  %v1692_v58 = vld [vmem:[%s3228_s9 + $0x38] sm:$0xff] }
 0x18c   : > { %2248 = vmatprep.subr.bf16.mxu0 %v2868_v36 }
 0x18d   : > { %2267 = vmatpush3.bf16.msra.mxu1 %v2644_v2 }
 0x18e   : > { %2268 = vmatprep.subr.bf16.mxu1 %v2868_v36 }
 0x18f   : > { %2249 = vmatpush3.bf16.msra.mxu0 %v2637_v59  ;;  %v1691_v59 = vld [vmem:[%s3228_s9 + $0x30] sm:$0xff] }
 0x190   : > { %2250 = vmatprep.subr.bf16.mxu0 %v2868_v36 }
 0x191   : > { %2269 = vmatpush3.bf16.msra.mxu1 %v2645_v3 }
 0x192   : > { %2270 = vmatprep.subr.bf16.mxu1 %v2868_v36 }
 0x193   : > { %2251 = vmatpush3.bf16.msra.mxu0 %v2638_v60  ;;  %v1690_v60 = vld [vmem:[%s3228_s9 + $0x28] sm:$0xff] }
 0x194   : > { %2276 = vmatprep.subr.mxu0 %v2868_v36 }
 0x195   : > { %2271 = vmatpush3.bf16.msra.mxu1 %v2646_v17 }
 0x196   : > { %2311 = vmatprep.subr.mxu1 %v2868_v36 }
 0x236   : > { %v2122_v4 = vpop.f32.mrf.mxu0  ;;  %v2144_v5 = vpop.f32.mrf.mxu1 }
 0x238   : > { %v2123_v6 = vpop.f32.mrf.mxu0  ;;  %v2145_v7 = vpop.f32.mrf.mxu1 }
 0x239   : > { %v2124_v8 = vadd.f32 %v2123_v6, %v2122_v4  ;;  %v2146_v9 = vadd.f32 %v2145_v7, %v2144_v5 }
 0x23a   : > { %v2125_v10 = vpop.f32.mrf.mxu0  ;;  %v2147_v11 = vpop.f32.mrf.mxu1 }
 0x23b   : > { %v1266_v12 = vadd.f32 %v2146_v9, %v2124_v8 }
 0x23c   : > { %v2126_v13 = vpop.f32.mrf.mxu0  ;;  %v2148_v14 = vpop.f32.mrf.mxu1 }
 0x23d   : > { %v1271_v15 = vmax.f32 %v1266_v12, 0.0 }
 0x23f   : > { %v1272_v16 = vpack.c.bf16 %v1271_v15, %v1271_v15 }
 0x241   : > { %2253 = vmatmul.mubr.bf16.vlgmr.msra.gmra.mxu0 %v1272_v16 }
 0x242   : > { %2308 = vmatprep.mubr.msk.f32.mxu0 %vm2869_vm0, %v2868_v36  ;;  %2277 = vmatpush3.msra.mxu0 %v1508_v18 }
 0x243   : > { %2278 = vmatprep.subr.mxu0 %v2868_v36 }
 0x244   : > { %2279 = vmatpush3.msra.mxu0 %v1507_v19 }
 0x245   : > { %2280 = vmatprep.subr.mxu0 %v2868_v36 }
 0x246   : > { %2281 = vmatpush3.msra.mxu0 %v1506_v20 }
 0x247   : > { %2282 = vmatprep.subr.mxu0 %v2868_v36 }
 0x248   : > { %2283 = vmatpush3.msra.mxu0 %v1505_v21 }
 0x249   : > { %2284 = vmatprep.subr.mxu0 %v2868_v36 }
 0x24a   : > { %2285 = vmatpush3.msra.mxu0 %v1504_v22 }
 0x24b   : > { %2286 = vmatprep.subr.mxu0 %v2868_v36 }
 0x24c   : > { %2287 = vmatpush3.msra.mxu0 %v1503_v23 }
 0x24d   : > { %2288 = vmatprep.subr.mxu0 %v2868_v36 }
 0x24e   : > { %2289 = vmatpush3.msra.mxu0 %v1502_v24 }
 0x24f   : > { %2290 = vmatprep.subr.mxu0 %v2868_v36 }
 0x250   : > { %2291 = vmatpush3.msra.mxu0 %v1501_v25 }
 0x251   : > { %2292 = vmatprep.subr.mxu0 %v2868_v36 }
 0x252   : > { %2293 = vmatpush3.msra.mxu0 %v1500_v26 }
 0x253   : > { %2294 = vmatprep.subr.mxu0 %v2868_v36 }
 0x254   : > { %2295 = vmatpush3.msra.mxu0 %v1499_v27 }
 0x255   : > { %2296 = vmatprep.subr.mxu0 %v2868_v36 }
 0x256   : > { %2297 = vmatpush3.msra.mxu0 %v1498_v28 }
 0x257   : > { %2298 = vmatprep.subr.mxu0 %v2868_v36 }
 0x258   : > { %2299 = vmatpush3.msra.mxu0 %v1497_v29 }
 0x259   : > { %2300 = vmatprep.subr.mxu0 %v2868_v36 }
 0x25a   : > { %2301 = vmatpush3.msra.mxu0 %v1496_v30 }
 0x25b   : > { %2302 = vmatprep.subr.mxu0 %v2868_v36 }
 0x25c   : > { %2303 = vmatpush3.msra.mxu0 %v1495_v31 }
 0x25d   : > { %2304 = vmatprep.subr.mxu0 %v2868_v36 }
 0x25e   : > { %2305 = vmatpush3.msra.mxu0 %v1494_v38 }
 0x25f   : > { %2306 = vmatprep.subr.mxu0 %v2868_v36 }
 0x260   : > { %2307 = vmatpush3.msra.mxu0 %v1493_v39 }
 0x261   : > { %2346 = vmatprep.subr.mxu0 %v2868_v36 }
 0x301   : > { %v1371_v32 = vpop.f32.mrf.mxu0 }
 0x302   : > { %v1377_v33 = vpack.c.bf16 %v1371_v32, %v1371_v32 }
 0x303   : > { %v2254_v34 = vpop.f32.mrf.mxu0 }
 0x304   : > { %2273 = vmatmul.mubr.bf16.vlgmr.msra.gmra.mxu1 %v1377_v33 }
 0x305   : > { %v1374_v35 = vpop.f32.mrf.mxu0  ;;  %2312 = vmatpush3.msra.mxu1 %v1508_v18  ;;  %2343 = vmatprep.mubr.msk.f32.mxu1 %vm2869_vm0, %v2868_v36 }
 0x306   : > { %2313 = vmatprep.subr.mxu1 %v2868_v36 }
 0x307   : > { %v2255_v37 = vpop.f32.mrf.mxu0  ;;  %2314 = vmatpush3.msra.mxu1 %v1507_v19 }
 0x308   : > { %2315 = vmatprep.subr.mxu1 %v2868_v36 }
 0x309   : > { %2316 = vmatpush3.msra.mxu1 %v1506_v20 }
 0x30a   : > { %2317 = vmatprep.subr.mxu1 %v2868_v36 }
 0x30b   : > { %2318 = vmatpush3.msra.mxu1 %v1505_v21 }
 0x30c   : > { %2319 = vmatprep.subr.mxu1 %v2868_v36 }
 0x30d   : > { %2320 = vmatpush3.msra.mxu1 %v1504_v22  ;;  %v1666_v22 = vld [vmem:[#allocation9] sm:$0x1] }
 0x30e   : > { %2321 = vmatprep.subr.mxu1 %v2868_v36 }
 0x30f   : > { %2322 = vmatpush3.msra.mxu1 %v1503_v23  ;;  %v1676_v23 = vsub.s32 0, %v3118_v41 }
 0x310   : > { %2323 = vmatprep.subr.mxu1 %v2868_v36 }
 0x311   : > { %2324 = vmatpush3.msra.mxu1 %v1502_v24 }
 0x312   : > { %2325 = vmatprep.subr.mxu1 %v2868_v36 }
 0x313   : > { %2326 = vmatpush3.msra.mxu1 %v1501_v25 }
 0x314   : > { %2327 = vmatprep.subr.mxu1 %v2868_v36 }
 0x315   : > { %2328 = vmatpush3.msra.mxu1 %v1500_v26  ;;  %v1670_v26 = vld [vmem:[#allocation10] sm:$0x1] }
 0x316   : > { %2329 = vmatprep.subr.mxu1 %v2868_v36 }
 0x317   : > { %2330 = vmatpush3.msra.mxu1 %v1499_v27 }
 0x318   : > { %2331 = vmatprep.subr.mxu1 %v2868_v36 }
 0x319   : > { %2332 = vmatpush3.msra.mxu1 %v1498_v28 }
 0x31a   : > { %2333 = vmatprep.subr.mxu1 %v2868_v36 }
 0x31b   : > { %2334 = vmatpush3.msra.mxu1 %v1497_v29 }
 0x31c   : > { %2335 = vmatprep.subr.mxu1 %v2868_v36 }
 0x31d   : > { %2336 = vmatpush3.msra.mxu1 %v1496_v30 }
 0x31e   : > { %2337 = vmatprep.subr.mxu1 %v2868_v36 }
 0x31f   : > { %2338 = vmatpush3.msra.mxu1 %v1495_v31 }
 0x320   : > { %2339 = vmatprep.subr.mxu1 %v2868_v36 }
 0x321   : > { %2340 = vmatpush3.msra.mxu1 %v1494_v38 }
 0x322   : > { %2341 = vmatprep.subr.mxu1 %v2868_v36 }
 0x323   : > { %2342 = vmatpush3.msra.mxu1 %v1493_v39 }
 0x324   : > { %2381 = vmatprep.subr.mxu1 %v2868_v36 }
 0x3c4   : > { %v1483_v43 = vpop.f32.mrf.mxu1 }
 0x3c5   : > { %v1484_v44 = vadd.f32 %v2093_v42, %v1483_v43 }
 0x3c6   : > { %v2274_v45 = vpop.f32.mrf.mxu1 }
 0x3c7   : > { %v3124_v46 = vsel %vm1491_vm1, %v1484_v44, 0.0  ;;  %2309 = vmatmul.mubr.msk.f32.vlgmr.msra.gmra.mxu0 %vm1491_vm1, %v1484_v44 }
 0x3c8   : > { %v1579_v47 = vmul.f32 %v3124_v46, %v3124_v46  ;;  %v1486_v48 = vpop.f32.mrf.mxu1  ;;  %2378 = vmatprep.mubr.msk.f32.mxu0 %vm2869_vm0, %v2868_v36  ;;  %2347 = vmatpush3.msra.mxu0 %v1700_v50 }
 0x3c9   : > { %2348 = vmatprep.subr.mxu0 %v2868_v36 }
 0x3ca   : > { %v2275_v49 = vpop.f32.mrf.mxu1  ;;  %2344 = vmatmul.mubr.f32.vlgmr.msra.gmra.mxu1 %v1579_v47  ;;  %2349 = vmatpush3.msra.mxu0 %v1699_v51 }
 0x3cb   : > { %2413 = vmatprep.mubr.msk.f32.mxu1 %vm2869_vm0, %v2868_v36  ;;  %2382 = vmatpush3.msra.mxu1 %v1700_v50 }
 0x3cc   : > { %2383 = vmatprep.subr.mxu1 %v2868_v36  ;;  %2350 = vmatprep.subr.mxu0 %v2868_v36 }
 0x3cd   : > { %2384 = vmatpush3.msra.mxu1 %v1699_v51  ;;  %2351 = vmatpush3.msra.mxu0 %v1698_v52 }
 0x3ce   : > { %2385 = vmatprep.subr.mxu1 %v2868_v36  ;;  %2352 = vmatprep.subr.mxu0 %v2868_v36 }
 0x3cf   : > { %2386 = vmatpush3.msra.mxu1 %v1698_v52  ;;  %2353 = vmatpush3.msra.mxu0 %v1697_v53 }
 0x3d0   : > { %2387 = vmatprep.subr.mxu1 %v2868_v36  ;;  %2354 = vmatprep.subr.mxu0 %v2868_v36 }
 0x3d1   : > { %2388 = vmatpush3.msra.mxu1 %v1697_v53  ;;  %2355 = vmatpush3.msra.mxu0 %v1696_v54 }
 0x3d2   : > { %2389 = vmatprep.subr.mxu1 %v2868_v36  ;;  %2356 = vmatprep.subr.mxu0 %v2868_v36 }
 0x3d3   : > { %2390 = vmatpush3.msra.mxu1 %v1696_v54  ;;  %2357 = vmatpush3.msra.mxu0 %v1695_v55 }
 0x3d4   : > { %2391 = vmatprep.subr.mxu1 %v2868_v36  ;;  %2358 = vmatprep.subr.mxu0 %v2868_v36 }
 0x3d5   : > { %2392 = vmatpush3.msra.mxu1 %v1695_v55  ;;  %2359 = vmatpush3.msra.mxu0 %v1694_v56 }
 0x3d6   : > { %2393 = vmatprep.subr.mxu1 %v2868_v36  ;;  %2360 = vmatprep.subr.mxu0 %v2868_v36 }
 0x3d7   : > { %2394 = vmatpush3.msra.mxu1 %v1694_v56  ;;  %2361 = vmatpush3.msra.mxu0 %v1693_v57 }
 0x3d8   : > { %2395 = vmatprep.subr.mxu1 %v2868_v36  ;;  %2362 = vmatprep.subr.mxu0 %v2868_v36 }
 0x3d9   : > { %2396 = vmatpush3.msra.mxu1 %v1693_v57  ;;  %2363 = vmatpush3.msra.mxu0 %v1692_v58 }
 0x3da   : > { %2397 = vmatprep.subr.mxu1 %v2868_v36  ;;  %2364 = vmatprep.subr.mxu0 %v2868_v36 }
 0x3db   : > { %2398 = vmatpush3.msra.mxu1 %v1692_v58  ;;  %2365 = vmatpush3.msra.mxu0 %v1691_v59 }
 0x3dc   : > { %2399 = vmatprep.subr.mxu1 %v2868_v36  ;;  %2366 = vmatprep.subr.mxu0 %v2868_v36 }
 0x3dd   : > { %2400 = vmatpush3.msra.mxu1 %v1691_v59  ;;  %2367 = vmatpush3.msra.mxu0 %v1690_v60 }
 0x3de   : > { %2401 = vmatprep.subr.mxu1 %v2868_v36  ;;  %2368 = vmatprep.subr.mxu0 %v2868_v36 }
 0x3df   : > { %2402 = vmatpush3.msra.mxu1 %v1690_v60  ;;  %2369 = vmatpush3.msra.mxu0 %v1689_v61 }
 0x3e0   : > { %2403 = vmatprep.subr.mxu1 %v2868_v36  ;;  %2370 = vmatprep.subr.mxu0 %v2868_v36 }
 0x3e1   : > { %2404 = vmatpush3.msra.mxu1 %v1689_v61  ;;  %2371 = vmatpush3.msra.mxu0 %v1688_v62 }
 0x3e2   : > { %2405 = vmatprep.subr.mxu1 %v2868_v36  ;;  %2372 = vmatprep.subr.mxu0 %v2868_v36 }
 0x3e3   : > { %2406 = vmatpush3.msra.mxu1 %v1688_v62  ;;  %2373 = vmatpush3.msra.mxu0 %v1687_v63 }
 0x3e4   : > { %2407 = vmatprep.subr.mxu1 %v2868_v36  ;;  %2374 = vmatprep.subr.mxu0 %v2868_v36 }
 0x3e5   : > { %2408 = vmatpush3.msra.mxu1 %v1687_v63  ;;  %2375 = vmatpush3.msra.mxu0 %v1686_v0 }
 0x3e6   : > { %2409 = vmatprep.subr.mxu1 %v2868_v36  ;;  %2376 = vmatprep.subr.mxu0 %v2868_v36 }
 0x3e7   : > { %2410 = vmatpush3.msra.mxu1 %v1686_v0  ;;  %2377 = vmatpush3.msra.mxu0 %v1685_v1 }
 0x3e8   : > { %2411 = vmatprep.subr.mxu1 %v2868_v36 }
 0x3e9   : > { %2412 = vmatpush3.msra.mxu1 %v1685_v1 }
 0x487   : > { %v1575_v2 = vpop.f32.mrf.mxu0 }
 0x488   : > { %v1650_v3 = vrot.slane %v1575_v2, 4 }
 0x489   : > { %v2310_v4 = vpop.f32.mrf.mxu0 }
 0x48a   : > { %v1651_v5 = vadd.f32 %v1650_v3, %v1575_v2  ;;  %v1646_v6 = vpop.f32.mrf.mxu1 }
 0x48b   : > { %v1657_v7 = vrot.slane %v1646_v6, 4 }
 0x48c   : > { %v1652_v8 = vrot.slane %v1651_v5, 2  ;;  %v2345_v9 = vpop.f32.mrf.mxu1 }
 0x48d   : > { %v1658_v10 = vadd.f32 %v1657_v7, %v1646_v6 }
 0x48e   : > { %v1653_v11 = vadd.f32 %v1652_v8, %v1651_v5 }
 0x48f   : > { %v1659_v12 = vrot.slane %v1658_v10, 2 }
 0x490   : > { %v1654_v13 = vrot.slane %v1653_v11, 1 }
 0x491   : > { %v1660_v14 = vadd.f32 %v1659_v12, %v1658_v10 }
 0x492   : > { %v1655_v15 = vadd.f32 %v1654_v13, %v1653_v11 }
 0x493   : > { %v1661_v16 = vrot.slane %v1660_v14, 1 }
 0x494   : > { %v1656_v17 = vmul.f32 0.013888889, %v1655_v15 }
 0x495   : > { %v1662_v18 = vadd.f32 %v1661_v16, %v1660_v14 }
 0x496   : > { %v1664_v36 = vmul.f32 %v1656_v17, %v1656_v17 }
 0x497   : > { %v1663_v19 = vmul.f32 0.013888889, %v1662_v18 }
 0x499   : > { %v1665_v20 = vsub.f32 %v1663_v19, %v1664_v36 }
 0x49b   : > { %v1667_v21 = vadd.f32 1e-05, %v1665_v20 }
 0x49d   : > { %2647 = vrsqrt.f32 %v1667_v21 }
 0x4aa   : > { %v2648_v24 = vpop.eup %2647 }
 0x4ab   : > { %v1669_v25 = vmul.f32 %v2648_v24, %v1666_v22 }
 0x4ad   : > { %v1677_v27 = vrot.slane %v1669_v25, %v1676_v23  ;;  %v1671_v28 = vmul.f32 %v1669_v25, %v1656_v17 }
 0x4af   : > { %2379 = vmatmul.mubr.f32.vlgmr.msra.gmra.mxu0 %v1677_v27  ;;  %v1672_v29 = vsub.f32 %v1670_v26, %v1671_v28 }
 0x4b1   : > { %v1683_v30 = vrot.slane %v1672_v29, %v1676_v23 }
 0x4b3   : > { %2414 = vmatmul.mubr.f32.vlgmr.msra.gmra.mxu1 %v1683_v30 }
 0x56f   : > { %v1767_v31 = vpop.f32.mrf.mxu0 }
 0x570   : > { %v1841_v33 = vmul.f32 %v1767_v31, %v3124_v46 }
 0x571   : > { %v2380_v32 = vpop.f32.mrf.mxu0 }
 0x573   : > { %v1837_v34 = vpop.f32.mrf.mxu1 }
 0x574   : > { %v1842_v35 = vadd.f32 %v1841_v33, %v1837_v34 }
 0x575   : > { %v2415_v37 = vpop.f32.mrf.mxu1 }
 0x576   : > { %v1843_v38 = vmax.f32 %v1842_v35, 0.0 }
 0x578   : > { %1844 = vst [vmem:[%s455_s24] sm:$0xff] %v1843_v38 }
 0x579 PF: > { %s24_s13 = sadd.s32 1, %s2853_s13  }
 0x57a   : > { %p21_p3 = scmp.ge.s32.totalorder %s24_s13, 4  }
 0x57c   :  { %23 = sbr.rel (!%p21_p3) target bundleno = 4 (0x4), region = 119 }
 0x581   :  { %1864 = vsyncpa [#allocation3], 1 }
 0x582   :  { %1866 = vsyncpa [#allocation3 + $0x1], 1 }
 0x583   :  { %1867 = vsyncpa [#allocation5], 1 }
 0x584   :  { %1868 = vsyncpa [#allocation8], 1 }
 0x585   :  { %1869 = vsyncpa [#allocation11], 1 }

</bundles_post_ra>
